<compile_context>
chip_gen: v5e
topology: v5e:2x2
jax: 0.10.0
libtpu: 0.0.40
codegen_flags: <defaults>
</compile_context>

<pallas_src>
import math

import jax
import jax.numpy as jnp
from jax.experimental import pallas as pl
from jax.experimental.pallas import tpu as pltpu


def _round_up(x, m):
    return ((x + m - 1) // m) * m


# ----------------------------------------------------------------------------
# Fused multi-head MLP kernel: one grid cell = (head h, batch tile b).
# Weight refs carry a leading size-1 head axis; x/out are (TILE_B, padded_dim).
# ----------------------------------------------------------------------------
def _dqn_heads_kernel(x_ref,
                      w1_ref, b1_ref,
                      w2_ref, b2_ref,
                      w3_ref, b3_ref,
                      w4_ref, b4_ref,
                      o_ref):
    x = x_ref[...]                                                   # bf16 (TILE_B, IN_P)
    h = jnp.dot(x, w1_ref[0], preferred_element_type=jnp.float32) + b1_ref[0]
    h = jnp.maximum(h, 0.0)
    h = jnp.dot(h.astype(jnp.bfloat16), w2_ref[0],
                preferred_element_type=jnp.float32) + b2_ref[0]
    h = jnp.maximum(h, 0.0)
    h = jnp.dot(h.astype(jnp.bfloat16), w3_ref[0],
                preferred_element_type=jnp.float32) + b3_ref[0]
    h = jnp.maximum(h, 0.0)
    out = jnp.dot(h.astype(jnp.bfloat16), w4_ref[0],
                  preferred_element_type=jnp.float32) + b4_ref[0]
    o_ref[0] = out.astype(o_ref.dtype)


def _fused_heads_call(x_p, packed, tile_b):
    """One pallas_call over all heads and batch tiles."""
    W1, B1, W2, B2, W3, B3, W4, B4 = packed["stacked"]
    H = W1.shape[0]
    B_pad, IN_P = x_p.shape
    D1, D2, D3, OUT_P = W1.shape[2], W2.shape[2], W3.shape[2], W4.shape[2]
    n_btiles = B_pad // tile_b

    def wmap(h, b):        # weights / biases: resident across the batch axis
        return (h, 0, 0)

    def xmap(h, b):        # shared input: resident across the head axis
        return (b, 0)

    def omap(h, b):
        return (h, b, 0)

    in_specs = [
        pl.BlockSpec((tile_b, IN_P), xmap),
        pl.BlockSpec((1, IN_P, D1), wmap), pl.BlockSpec((1, 1, D1), wmap),
        pl.BlockSpec((1, D1, D2), wmap),   pl.BlockSpec((1, 1, D2), wmap),
        pl.BlockSpec((1, D2, D3), wmap),   pl.BlockSpec((1, 1, D3), wmap),
        pl.BlockSpec((1, D3, OUT_P), wmap), pl.BlockSpec((1, 1, OUT_P), wmap),
    ]
    out_spec = pl.BlockSpec((1, tile_b, OUT_P), omap)

    return pl.pallas_call(
        _dqn_heads_kernel,
        out_shape=jax.ShapeDtypeStruct((H, B_pad, OUT_P), jnp.float32),
        grid=(H, n_btiles),
        in_specs=in_specs,
        out_specs=out_spec,
        compiler_params=pltpu.CompilerParams(
            dimension_semantics=("parallel", "parallel")),
    )(x_p, W1, B1, W2, B2, W3, B3, W4, B4)


# ----------------------------------------------------------------------------
# Parameter construction (mimics torch.nn.Linear default init; last-layer bias
# zeroed exactly like DQNFC.init()). Logical params are f32 (in, out) / (out,).
# ----------------------------------------------------------------------------
def _init_linear(key, fan_in, fan_out, zero_bias=False):
    kw, kb = jax.random.split(key)
    bound = 1.0 / math.sqrt(fan_in)
    w = jax.random.uniform(kw, (fan_in, fan_out), jnp.float32, -bound, bound)
    if zero_bias:
        b = jnp.zeros((fan_out,), jnp.float32)
    else:
        b = jax.random.uniform(kb, (fan_out,), jnp.float32, -bound, bound)
    return w, b


def init_dqnfc_params(key, num_actions, state_size, hidden_dim=256):
    heads = []
    for i, num_action in enumerate(num_actions):
        hkey = jax.random.fold_in(key, i)
        k1, k2, k3, k4 = jax.random.split(hkey, 4)
        heads.append((
            _init_linear(k1, state_size, hidden_dim),
            _init_linear(k2, hidden_dim, hidden_dim // 2),
            _init_linear(k3, hidden_dim // 2, hidden_dim // 4),
            _init_linear(k4, hidden_dim // 4, num_action, zero_bias=True),
        ))
    return heads


def pack_dqnfc_params(heads, num_actions, state_size, hidden_dim=256):
    """Stack per-head weights into lane-dense (128-padded) bf16 slabs."""
    H = len(heads)
    dims = [state_size, hidden_dim, hidden_dim // 2, hidden_dim // 4,
            max(num_actions)]
    pdims = [_round_up(d, 128) for d in dims]

    stacked = []
    for layer in range(4):
        pin, pout = pdims[layer], pdims[layer + 1]
        Ws, Bs = [], []
        for h in range(H):
            w, b = heads[h][layer]
            wp = jnp.zeros((pin, pout), jnp.float32)
            wp = wp.at[:w.shape[0], :w.shape[1]].set(w)
            bp = jnp.zeros((1, pout), jnp.float32)
            bp = bp.at[0, :b.shape[0]].set(b)
            Ws.append(wp)
            Bs.append(bp)
        stacked.append(jnp.stack(Ws).astype(jnp.bfloat16))   # (H, pin, pout) bf16
        stacked.append(jnp.stack(Bs))                        # (H, 1, pout)  f32
    return {
        "stacked": tuple(stacked),
        "num_actions": tuple(num_actions),
        "state_size": state_size,
        "in_pad": pdims[0],
    }


# ----------------------------------------------------------------------------
# Forward pass matching DQNFC.forward semantics.
# ----------------------------------------------------------------------------
def dqnfc_forward(packed, state, training=False):
    low_dim_state = state["low_dim_states"]
    if low_dim_state.ndim == 1:
        low_dim_state = low_dim_state[None, :]
        unsqueezed = True
    else:
        unsqueezed = False

    B, S = low_dim_state.shape
    IN_P = packed["in_pad"]

    # Batch tiling: match MXU-friendly tile sizes for real batches, pad tiny
    # batches up to a sublane multiple (8). Weights stay resident; only the
    # activation tiles stream, keeping VMEM well under v7x's 64 MiB budget.
    if B >= 256:
        tile_b = 256
    elif B >= 128:
        tile_b = 128
    else:
        tile_b = _round_up(B, 8)
    B_pad = _round_up(B, tile_b)

    x_p = jnp.pad(low_dim_state.astype(jnp.bfloat16),
                  ((0, B_pad - B), (0, IN_P - S)))

    out = _fused_heads_call(x_p, packed, tile_b)      # (H, B_pad, OUT_P) f32

    results = [out[h, :B, :na]
               for h, na in enumerate(packed["num_actions"])]
    if unsqueezed:
        results = [jnp.squeeze(r, axis=0) for r in results]
    if training:
        aux_losses = {}
        return (results, aux_losses)
    return results


# Pure-JAX f32 reference for correctness check.
def _ref_head(x, head_params):
    h = x
    for i, (w, b) in enumerate(head_params):
        h = h @ w + b
        if i < 3:
            h = jnp.maximum(h, 0.0)
    return h


if __name__ == "__main__":
    key = jax.random.PRNGKey(0)

    # Small shapes consistent with the module.
    num_actions = (4, 3)     # two Q-heads
    state_size = 32
    hidden_dim = 32
    batch = 2

    pkey, xkey = jax.random.split(key)
    heads = init_dqnfc_params(pkey, num_actions, state_size, hidden_dim)
    packed = pack_dqnfc_params(heads, num_actions, state_size, hidden_dim)

    low_dim_states = jax.random.normal(xkey, (batch, state_size), jnp.float32)
    state = {"low_dim_states": low_dim_states}

    # Run the Pallas-backed forward (inference mode: returns list of Q-values).
    outs = dqnfc_forward(packed, state, training=False)
    outs = [jax.block_until_ready(o) for o in outs]

    # Validate against the pure-JAX f32 reference. Tolerance loosened because
    # the kernel uses bf16 MXU inputs with f32 accumulation.
    refs = [_ref_head(low_dim_states, hp) for hp in heads]
    for o, r, na in zip(outs, refs, num_actions):
        assert o.shape == (batch, na), o.shape
        err = float(jnp.max(jnp.abs(o - r)))
        assert jnp.allclose(o, r, atol=5e-2, rtol=5e-2), \
            f"mismatch vs reference (max abs err {err})"

    # Also exercise the 1-D (unsqueezed) input path.
    outs_1d = dqnfc_forward(packed, {"low_dim_states": low_dim_states[0]})
    outs_1d = [jax.block_until_ready(o) for o in outs_1d]
    for o, na in zip(outs_1d, num_actions):
        assert o.shape == (na,), o.shape

    # Training-mode path (returns (q_values, aux_losses)).
    tr_outs, aux = dqnfc_forward(packed, state, training=True)
    tr_outs = [jax.block_until_ready(o) for o in tr_outs]
    assert aux == {}

    print("KERNEL_OK")
</pallas_src>

<mosaic_0001>
module attributes {stable_mosaic.version = 11 : i64} {
  func.func @_dqn_heads_kernel(%arg0: i32, %arg1: i32, %arg2: memref<8x128xbf16, #tpu.memory_space<vmem>>, %arg3: memref<1x128x128xbf16, #tpu.memory_space<vmem>>, %arg4: memref<1x1x128xf32, #tpu.memory_space<vmem>>, %arg5: memref<1x128x128xbf16, #tpu.memory_space<vmem>>, %arg6: memref<1x1x128xf32, #tpu.memory_space<vmem>>, %arg7: memref<1x128x128xbf16, #tpu.memory_space<vmem>>, %arg8: memref<1x1x128xf32, #tpu.memory_space<vmem>>, %arg9: memref<1x128x128xbf16, #tpu.memory_space<vmem>>, %arg10: memref<1x1x128xf32, #tpu.memory_space<vmem>>, %arg11: memref<1x8x128xf32, #tpu.memory_space<vmem>>) attributes {dimension_semantics = [#tpu.dimension_semantics<parallel>, #tpu.dimension_semantics<parallel>], iteration_bounds = array<i64: 2, 1>, scalar_prefetch = 0 : i64, scratch_operands = 0 : i64, tpu.core_type = #tpu.core_type<tc>, window_params = [{transform_indices = @transform_0, window_bounds = array<i64: 8, 128>}, {transform_indices = @transform_1, window_bounds = array<i64: 1, 128, 128>}, {transform_indices = @transform_2, window_bounds = array<i64: 1, 1, 128>}, {transform_indices = @transform_3, window_bounds = array<i64: 1, 128, 128>}, {transform_indices = @transform_4, window_bounds = array<i64: 1, 1, 128>}, {transform_indices = @transform_5, window_bounds = array<i64: 1, 128, 128>}, {transform_indices = @transform_6, window_bounds = array<i64: 1, 1, 128>}, {transform_indices = @transform_7, window_bounds = array<i64: 1, 128, 128>}, {transform_indices = @transform_8, window_bounds = array<i64: 1, 1, 128>}, {transform_indices = @transform_9, window_bounds = array<i64: 1, 8, 128>}]} {
    %c0 = arith.constant 0 : index
    %c0_0 = arith.constant 0 : index
    %0 = vector.load %arg2[%c0, %c0_0] : memref<8x128xbf16, #tpu.memory_space<vmem>>, vector<8x128xbf16>
    %c0_1 = arith.constant 0 : index
    %c0_2 = arith.constant 0 : index
    %c0_3 = arith.constant 0 : index
    %1 = vector.load %arg3[%c0_1, %c0_2, %c0_3] : memref<1x128x128xbf16, #tpu.memory_space<vmem>>, vector<1x128x128xbf16>
    %2 = vector.shape_cast %1 : vector<1x128x128xbf16> to vector<128x128xbf16>
    %cst = arith.constant dense<0.000000e+00> : vector<8x128xf32>
    %3 = tpu.matmul %0, %2, %cst {dimension_numbers = #tpu.dot_dimension_numbers<[1], [0], [0], [1], [0, 0, 1, 1], [], []>} : vector<8x128xbf16>, vector<128x128xbf16>, vector<8x128xf32> -> vector<8x128xf32>
    %c0_4 = arith.constant 0 : index
    %c0_5 = arith.constant 0 : index
    %c0_6 = arith.constant 0 : index
    %4 = vector.load %arg4[%c0_4, %c0_5, %c0_6] : memref<1x1x128xf32, #tpu.memory_space<vmem>>, vector<1x1x128xf32>
    %5 = vector.shape_cast %4 : vector<1x1x128xf32> to vector<1x128xf32>
    %6 = vector.broadcast %5 : vector<1x128xf32> to vector<8x128xf32>
    %7 = arith.addf %3, %6 : vector<8x128xf32>
    %cst_7 = arith.constant 0.000000e+00 : f32
    %8 = vector.broadcast %cst_7 : f32 to vector<8x128xf32>
    %9 = arith.maximumf %7, %8 : vector<8x128xf32>
    %10 = arith.truncf %9 : vector<8x128xf32> to vector<8x128xbf16>
    %c0_8 = arith.constant 0 : index
    %c0_9 = arith.constant 0 : index
    %c0_10 = arith.constant 0 : index
    %11 = vector.load %arg5[%c0_8, %c0_9, %c0_10] : memref<1x128x128xbf16, #tpu.memory_space<vmem>>, vector<1x128x128xbf16>
    %12 = vector.shape_cast %11 : vector<1x128x128xbf16> to vector<128x128xbf16>
    %cst_11 = arith.constant dense<0.000000e+00> : vector<8x128xf32>
    %13 = tpu.matmul %10, %12, %cst_11 {dimension_numbers = #tpu.dot_dimension_numbers<[1], [0], [0], [1], [0, 0, 1, 1], [], []>} : vector<8x128xbf16>, vector<128x128xbf16>, vector<8x128xf32> -> vector<8x128xf32>
    %c0_12 = arith.constant 0 : index
    %c0_13 = arith.constant 0 : index
    %c0_14 = arith.constant 0 : index
    %14 = vector.load %arg6[%c0_12, %c0_13, %c0_14] : memref<1x1x128xf32, #tpu.memory_space<vmem>>, vector<1x1x128xf32>
    %15 = vector.shape_cast %14 : vector<1x1x128xf32> to vector<1x128xf32>
    %16 = vector.broadcast %15 : vector<1x128xf32> to vector<8x128xf32>
    %17 = arith.addf %13, %16 : vector<8x128xf32>
    %cst_15 = arith.constant 0.000000e+00 : f32
    %18 = vector.broadcast %cst_15 : f32 to vector<8x128xf32>
    %19 = arith.maximumf %17, %18 : vector<8x128xf32>
    %20 = arith.truncf %19 : vector<8x128xf32> to vector<8x128xbf16>
    %c0_16 = arith.constant 0 : index
    %c0_17 = arith.constant 0 : index
    %c0_18 = arith.constant 0 : index
    %21 = vector.load %arg7[%c0_16, %c0_17, %c0_18] : memref<1x128x128xbf16, #tpu.memory_space<vmem>>, vector<1x128x128xbf16>
    %22 = vector.shape_cast %21 : vector<1x128x128xbf16> to vector<128x128xbf16>
    %cst_19 = arith.constant dense<0.000000e+00> : vector<8x128xf32>
    %23 = tpu.matmul %20, %22, %cst_19 {dimension_numbers = #tpu.dot_dimension_numbers<[1], [0], [0], [1], [0, 0, 1, 1], [], []>} : vector<8x128xbf16>, vector<128x128xbf16>, vector<8x128xf32> -> vector<8x128xf32>
    %c0_20 = arith.constant 0 : index
    %c0_21 = arith.constant 0 : index
    %c0_22 = arith.constant 0 : index
    %24 = vector.load %arg8[%c0_20, %c0_21, %c0_22] : memref<1x1x128xf32, #tpu.memory_space<vmem>>, vector<1x1x128xf32>
    %25 = vector.shape_cast %24 : vector<1x1x128xf32> to vector<1x128xf32>
    %26 = vector.broadcast %25 : vector<1x128xf32> to vector<8x128xf32>
    %27 = arith.addf %23, %26 : vector<8x128xf32>
    %cst_23 = arith.constant 0.000000e+00 : f32
    %28 = vector.broadcast %cst_23 : f32 to vector<8x128xf32>
    %29 = arith.maximumf %27, %28 : vector<8x128xf32>
    %30 = arith.truncf %29 : vector<8x128xf32> to vector<8x128xbf16>
    %c0_24 = arith.constant 0 : index
    %c0_25 = arith.constant 0 : index
    %c0_26 = arith.constant 0 : index
    %31 = vector.load %arg9[%c0_24, %c0_25, %c0_26] : memref<1x128x128xbf16, #tpu.memory_space<vmem>>, vector<1x128x128xbf16>
    %32 = vector.shape_cast %31 : vector<1x128x128xbf16> to vector<128x128xbf16>
    %cst_27 = arith.constant dense<0.000000e+00> : vector<8x128xf32>
    %33 = tpu.matmul %30, %32, %cst_27 {dimension_numbers = #tpu.dot_dimension_numbers<[1], [0], [0], [1], [0, 0, 1, 1], [], []>} : vector<8x128xbf16>, vector<128x128xbf16>, vector<8x128xf32> -> vector<8x128xf32>
    %c0_28 = arith.constant 0 : index
    %c0_29 = arith.constant 0 : index
    %c0_30 = arith.constant 0 : index
    %34 = vector.load %arg10[%c0_28, %c0_29, %c0_30] : memref<1x1x128xf32, #tpu.memory_space<vmem>>, vector<1x1x128xf32>
    %35 = vector.shape_cast %34 : vector<1x1x128xf32> to vector<1x128xf32>
    %36 = vector.broadcast %35 : vector<1x128xf32> to vector<8x128xf32>
    %37 = arith.addf %33, %36 : vector<8x128xf32>
    %c0_31 = arith.constant 0 : index
    %c0_32 = arith.constant 0 : index
    %c0_33 = arith.constant 0 : index
    %38 = vector.load %arg11[%c0_31, %c0_32, %c0_33] : memref<1x8x128xf32, #tpu.memory_space<vmem>>, vector<1x8x128xf32>
    %39 = vector.shape_cast %38 : vector<1x8x128xf32> to vector<8x128xf32>
    %40 = vector.shape_cast %37 : vector<8x128xf32> to vector<1x8x128xf32>
    tpu.vector_store %arg11[%c0_31, %c0_32, %c0_33], %40 {strides = array<i32>} : memref<1x8x128xf32, #tpu.memory_space<vmem>>, vector<1x8x128xf32>,
    return
  }
  func.func @transform_0(%arg0: i32, %arg1: i32) -> (i32, i32) {
    %c0_i32 = arith.constant 0 : i32
    %c0_i32_0 = arith.constant 0 : i32
    return %arg1, %c0_i32 : i32, i32
  }
  func.func @transform_1(%arg0: i32, %arg1: i32) -> (i32, i32, i32) {
    %c0_i32 = arith.constant 0 : i32
    %c0_i32_0 = arith.constant 0 : i32
    %c0_i32_1 = arith.constant 0 : i32
    return %arg0, %c0_i32, %c0_i32_0 : i32, i32, i32
  }
  func.func @transform_2(%arg0: i32, %arg1: i32) -> (i32, i32, i32) {
    %c0_i32 = arith.constant 0 : i32
    %c0_i32_0 = arith.constant 0 : i32
    %c0_i32_1 = arith.constant 0 : i32
    return %arg0, %c0_i32, %c0_i32_0 : i32, i32, i32
  }
  func.func @transform_3(%arg0: i32, %arg1: i32) -> (i32, i32, i32) {
    %c0_i32 = arith.constant 0 : i32
    %c0_i32_0 = arith.constant 0 : i32
    %c0_i32_1 = arith.constant 0 : i32
    return %arg0, %c0_i32, %c0_i32_0 : i32, i32, i32
  }
  func.func @transform_4(%arg0: i32, %arg1: i32) -> (i32, i32, i32) {
    %c0_i32 = arith.constant 0 : i32
    %c0_i32_0 = arith.constant 0 : i32
    %c0_i32_1 = arith.constant 0 : i32
    return %arg0, %c0_i32, %c0_i32_0 : i32, i32, i32
  }
  func.func @transform_5(%arg0: i32, %arg1: i32) -> (i32, i32, i32) {
    %c0_i32 = arith.constant 0 : i32
    %c0_i32_0 = arith.constant 0 : i32
    %c0_i32_1 = arith.constant 0 : i32
    return %arg0, %c0_i32, %c0_i32_0 : i32, i32, i32
  }
  func.func @transform_6(%arg0: i32, %arg1: i32) -> (i32, i32, i32) {
    %c0_i32 = arith.constant 0 : i32
    %c0_i32_0 = arith.constant 0 : i32
    %c0_i32_1 = arith.constant 0 : i32
    return %arg0, %c0_i32, %c0_i32_0 : i32, i32, i32
  }
  func.func @transform_7(%arg0: i32, %arg1: i32) -> (i32, i32, i32) {
    %c0_i32 = arith.constant 0 : i32
    %c0_i32_0 = arith.constant 0 : i32
    %c0_i32_1 = arith.constant 0 : i32
    return %arg0, %c0_i32, %c0_i32_0 : i32, i32, i32
  }
  func.func @transform_8(%arg0: i32, %arg1: i32) -> (i32, i32, i32) {
    %c0_i32 = arith.constant 0 : i32
    %c0_i32_0 = arith.constant 0 : i32
    %c0_i32_1 = arith.constant 0 : i32
    return %arg0, %c0_i32, %c0_i32_0 : i32, i32, i32
  }
  func.func @transform_9(%arg0: i32, %arg1: i32) -> (i32, i32, i32) {
    %c0_i32 = arith.constant 0 : i32
    %c0_i32_0 = arith.constant 0 : i32
    return %arg0, %arg1, %c0_i32 : i32, i32, i32
  }
}

</mosaic_0001>

<bundles_post_ra>
// kernel: tpu_custom_call.1
= control target key start
LH: loop header
LB: loop body
LE: loop exit
PB: predicated region body
PF: predicated region fallthrough
CT: control target
= control target key end

     0   :  { %s2047_s0 = inlined_call_operand.hbm [shape: bf16[8,128], index: 0, kind: input, shape index: {}]   ;;  %s2048_s1 = inlined_call_operand.hbm [shape: bf16[2,128,128], index: 1, kind: input, shape index: {}]   ;;  %s2049_s2 = inlined_call_operand.hbm [shape: f32[2,1,128], index: 2, kind: input, shape index: {}]   ;;  %s2050_s3 = inlined_call_operand.hbm [shape: bf16[2,128,128], index: 3, kind: input, shape index: {}]   ;;  %s2051_s4 = inlined_call_operand.vmem [shape: f32[2,1,128], index: 4, kind: input, shape index: {}]   ;;  %s2052_s5 = inlined_call_operand.hbm [shape: bf16[2,128,128], index: 5, kind: input, shape index: {}]   ;;  %s2053_s6 = inlined_call_operand.vmem [shape: f32[2,1,128], index: 6, kind: input, shape index: {}]   ;;  %s2054_s7 = inlined_call_operand.hbm [shape: bf16[2,128,128], index: 7, kind: input, shape index: {}]   ;;  %s2055_s8 = inlined_call_operand.vmem [shape: f32[2,1,128], index: 8, kind: input, shape index: {}]   ;;  %s2056_s9 = inlined_call_operand.hbm [shape: f32[2,8,128], index: 9, kind: output, shape index: {}]  }
   0x1   :  { %2069 = sst [smem:[#allocation26_spill]] %s2047_s0 }
   0x2   :  { %2070 = sst [smem:[#allocation27_spill]] %s2048_s1 }
   0x3   :  { %2071 = sst [smem:[#allocation28_spill]] %s2049_s2 }
   0x4   :  { %2072 = sst [smem:[#allocation29_spill]] %s2050_s3 }
   0x5   :  { %2073 = sst [smem:[#allocation30_spill]] %s2056_s9 }
   0x6   :  { %14 = vsyncpa [#allocation3], 0 }
   0x7   :  { %15 = vsyncpa [#allocation6], 0 }
   0x8   :  { %17 = vsyncpa [#allocation6 + $0x1], 0 }
   0x9   :  { %18 = vsyncpa [#allocation9], 0 }
   0xa   :  { %20 = vsyncpa [#allocation9 + $0x1], 0 }
   0xb   :  { %21 = vsyncpa [#allocation12], 0 }
   0xc   :  { %23 = vsyncpa [#allocation12 + $0x1], 0 }
   0xd   :  { %24 = vsyncpa [#allocation4], 0 }
   0xe   :  { %26 = vsyncpa [#allocation4 + $0x1], 0  ;;  %s1757_s30 = smov 0   ;;  %s1759_s10 = smov 0  }
   0xf   :  { %s1761_s11 = smov 0   ;;  %s1763_s12 = smov 0  }
  0x10   :  { %s1765_s13 = smov 0   ;;  %s1767_s14 = smov 0  }
  0x11 LB: > { %2074 = sst [smem:[#allocation19_spill]] %s1682_s30  ;;  %s44_s15 = sadd.s32 1, %s1698_s13  ;;  %s1702_s14 = sphi %s1767_s14, %s32_s14   ;;  %s1698_s13 = sphi %s1765_s13, %s2100_s13   ;;  %s1694_s12 = sphi %s1763_s12, %s2099_s12   ;;  %s1690_s11 = sphi %s1761_s11, %s2103_s11   ;;  %s1686_s10 = sphi %s1759_s10, %s2102_s10   ;;  %s1682_s30 = sphi %s1757_s30, %s2101_s30  }
  0x12   : > { %2075 = sst [smem:[#allocation20_spill]] %s1690_s11  ;;  %s77_s16 = sadd.s32 1, %s1690_s11 }
  0x13   : > { %2076 = sst [smem:[#allocation21_spill]] %s1698_s13  ;;  %p46_p0 = scmp.ge.s32.totalorder %s44_s15, 2 }
  0x14   : > { %2077 = sst [smem:[#allocation22_spill]] %s1702_s14  ;;  %p84_p1 = scmp.ne.s32.totalorder %s1690_s11, %s1686_s10 }
  0x15   : > { %p85_p2 = scmp.eq.s32.totalorder %s1702_s14, 0  ;;  %p1141_p3 = scmp.ge.s32.totalorder %s1702_s14, 2 }
  0x16   : > { %s2105_s15 = smov (%p46_p0, %s44_s15), 0  ;;  %p1370_p5 = scmp.lt.s32.totalorder %s1702_s14, 2 }
  0x17   : > { %2078 = sst [smem:[#allocation23_spill]] %s2105_s15  ;;  %p1798_p4 = por %p85_p2, %p84_p1 }
  0x18   : > { %s74_s18 = ssub.s32 %s1698_s13, %s2105_s15  ;;  %s338_s19 = sand.u32 1, %s1702_s14  }
  0x19   : > { %p75_p6 = scmp.eq.s32.totalorder %s74_s18, 0  ;;  %s1807_s20 = sand.u32 1, %s1690_s11  }
  0x1a   : > { %s1810_s21 = sshll.u32 %s1698_s13, 6  ;;  %s1816_s23 = sshll.u32 %s1807_s20, 6 }
  0x1b   : > { %s1813_s22 = scalar_select %p75_p6, %s1690_s11, %s77_s16  }
  0x1c   : > { %s2081_s1 = sld [smem:[#allocation27_spill]]  ;;  %s342_s28 = scalar_lea.vmem [#allocation5], %s1816_s23 }
  0x1d   : > { %2080 = sst [smem:[#allocation24_spill]] %s1813_s22  ;;  %s350_s29 = sshll.u32 %s342_s28, 4  ;;  %s351_s29 = int_to_ptr.vmem [resolvable:$true] %s350_s29 }
  0x1e   : > { %p1827_p7 = pnand %p1370_p5, %p1798_p4  ;;  %s1831_s18 = scalar_lea.sflag [#allocation6], %s338_s19 }
  0x1f   : > { %s2059_s24 = smov 64   ;;  %s2061_s25 = smov 4  }
  0x20   : > { %s2083_s3 = sld [smem:[#allocation29_spill]]  ;;  %s381_s15 = scalar_lea.vmem [#allocation8], %s1816_s23 }
  0x21   : > { %s389_s22 = sshll.u32 %s381_s15, 4  ;;  %s1844_s9 = scalar_lea.sflag [#allocation9], %s338_s19  ;;  %s390_s22 = int_to_ptr.vmem [resolvable:$true] %s389_s22 }
  0x22   : > { %s347_s26 = scalar_lea.hbm %s2081_s1, %s1810_s21  ;;  %p90_p8 = scmp.ne.s32.totalorder %s1686_s10, %s1682_s30 }
  0x23   : > { %s348_s27 = sshll.u32 %s347_s26, 4  ;;  %p1139_p13 = scmp.ge.s32.totalorder %s1702_s14, 1  ;;  %s349_s27 = int_to_ptr.hbm [resolvable:$true] %s348_s27 }
  0x24   : > { %1352 = dma.hbm_to_vmem [thread:$0]  (!%p1827_p7), %s349_s27, 1024, %s351_s29, %s1831_s18, %s2059_s24, %s2059_s24, %s2061_s25  }
  0x25   : > { %s1853_s27 = sadd.s32 4294967295, %s1702_s14   ;;  %s1138_s29 = sadd.s32 4294967294, %s1702_s14  }
  0x26   : > { %s386_s28 = scalar_lea.hbm %s2083_s3, %s1810_s21  ;;  %p91_p9 = scmp.eq.s32.totalorder %s1853_s27, 0 }
  0x27   : > { %s387_s1 = sshll.u32 %s386_s28, 4  ;;  %p298_p10 = scmp.eq.s32.totalorder %s1853_s27, 1  ;;  %s388_s1 = int_to_ptr.hbm [resolvable:$true] %s387_s1 }
  0x28   : > { %1358 = dma.hbm_to_vmem [thread:$0]  (!%p1827_p7), %s388_s1, 1024, %s390_s22, %s1844_s9, %s2059_s24, %s2059_s24, %s2061_s25  }
  0x29   : > { %p304_p11 = scmp.eq.s32.totalorder %s1138_s29, 1  ;;  %p1862_p12 = por %p91_p9, %p90_p8 }
  0x2a   : > { %p1870_p0 = por %p298_p10, %p84_p1  ;;  %p311_p4 = scmp.lt.s32.totalorder %s1702_s14, 3 }
  0x2b   : > { %p1874_p2 = por %p304_p11, %p90_p8  ;;  %s2088_s0 = sld [smem:[#allocation26_spill]] }
  0x2c   : > { %p1882_p5 = pnand %p1139_p13, %p311_p4  ;;  %s1706_s29 = smov [#allocation2]  }
  0x2d   : > { %s2086_s19 = scalar_select %p1874_p2, 1, 0 }
  0x2e   : > { %s327_s24 = sshll.u32 %s1706_s29, 4  ;;  %p1345_p1 = pneg %p1882_p5  ;;  %s328_s24 = int_to_ptr.vmem [resolvable:$true] %s327_s24 }
  0x2f   : > { %2087 = sst [smem:[#allocation25_spill]] %s2086_s19  ;;  %s363_s17 = scalar_lea.vmem [#allocation7], %s1807_s20 }
  0x30   : > { %s2090_s2 = sld [smem:[#allocation28_spill]]  ;;  %p1346_p6 = pnand %p1345_p1, %p91_p9 }
  0x31   : > { %s325_s26 = sshll.u32 %s2088_s0, 4  ;;  %s370_s0 = sshll.u32 %s363_s17, 4  ;;  %s326_s26 = int_to_ptr.hbm [resolvable:$true] %s325_s26  ;;  %s371_s0 = int_to_ptr.vmem [resolvable:$true] %s370_s0 }
  0x32   : > { %1348 = dma.hbm_to_vmem [thread:$0]  (!%p1346_p6), %s326_s26, 64, %s328_s24, [#allocation3]  }
  0x33   : > { %s414_s3 = scalar_lea.hbm %s2052_s5, %s1810_s21  ;;  %s409_s25 = scalar_lea.vmem [#allocation10], %s1816_s23 }
  0x34   : > { %s2091_s17 = smov 4   ;;  %s2092_s19 = smov 64  }
  0x35   : > { %s442_s24 = scalar_lea.hbm %s2054_s7, %s1810_s21  ;;  %s434_s14 = scalar_lea.sflag [#allocation12], %s1807_s20 }
  0x36   : > { %s366_s22 = scalar_lea.hbm %s2090_s2, %s1698_s13  ;;  %s417_s2 = sshll.u32 %s409_s25, 4  ;;  %s418_s2 = int_to_ptr.vmem [resolvable:$true] %s417_s2 }
  0x37   : > { %s368_s11 = sshll.u32 %s366_s22, 4  ;;  %s415_s13 = sshll.u32 %s414_s3, 4  ;;  %s369_s11 = int_to_ptr.hbm [resolvable:$true] %s368_s11  ;;  %s416_s13 = int_to_ptr.hbm [resolvable:$true] %s415_s13 }
  0x38   : > { %1355 = dma.hbm_to_vmem [thread:$0]  (!%p1827_p7), %s369_s11, 16, %s371_s0, %s1831_s18  }
  0x39   : > { %1361 = dma.hbm_to_vmem [thread:$0]  (!%p1827_p7), %s416_s13, 1024, %s418_s2, %s1844_s9, %s2092_s19, %s2092_s19, %s2091_s17  }
  0x3a   : > { %s443_s26 = sshll.u32 %s442_s24, 4  ;;  %s437_s0 = scalar_lea.vmem [#allocation11], %s1816_s23  ;;  %s444_s26 = int_to_ptr.hbm [resolvable:$true] %s443_s26 }
  0x3b   : > { %s445_s11 = sshll.u32 %s437_s0, 4  ;;  %463 = sbr.rel (%p1882_p5) target bundleno = 649 (0x289), region = 56  ;;  %s446_s11 = int_to_ptr.vmem [resolvable:$true] %s445_s11 }
  0x3c   : > { %1364 = dma.hbm_to_vmem [thread:$0]  (!%p1827_p7), %s444_s26, 1024, %s446_s11, %s434_s14, %s2092_s19, %s2092_s19, %s2091_s17  }
  0x40   : > { %1661 = dma.done.wait (%p91_p9), [#allocation3], 64  }
  0x41   : > { %1663 = vsyncadd (%p91_p9), [#allocation3], 4294967232  ;;  %s470_s2 = sand.u32 1, %s1853_s27   ;;  %s1928_s9 = sand.u32 1, %s1686_s10  }
  0x42   : > { %s1156_s30 = sshll.u32 %s1928_s9, 6  ;;  %s471_s13 = scalar_lea.sflag [#allocation6], %s470_s2 }
  0x43   : > { %s1931_s20 = scalar_lea.vmem [#allocation5], %s1156_s30 }
  0x44   : > { %1665 = dma.done.wait (%p1862_p12), %s471_s13, 1040  }
  0x45   : > { %1667 = vsyncadd (%p1862_p12), %s471_s13, 4294966256  ;;  %s483_s21 = scalar_lea.vmem [#allocation7], %s1928_s9  ;;  %s490_s23 = scalar_lea.sflag [#allocation9], %s470_s2 }
  0x46   : > { %s1938_s16 = scalar_lea.vmem [#allocation8], %s1156_s30 }
  0x47   : > { %1669 = dma.done.wait (%p1862_p12), %s490_s23, 2048  }
  0x48   : > { %1671 = vsyncadd (%p1862_p12), %s490_s23, 4294965248  ;;  %s1944_s18 = scalar_lea.vmem [#allocation10], %s1156_s30  ;;  %s510_s27 = scalar_lea.sflag [#allocation12], %s1928_s9 }
  0x49   : > { %s1947_s19 = scalar_lea.vmem [#allocation11], %s1156_s30 }
  0x4a   : > { %1673 = dma.done.wait (%p1862_p12), %s510_s27, 1024  }
  0x4b   : > { %1675 = vsyncadd (%p1862_p12), %s510_s27, 4294966272  ;;  %v1304_v0 = vld [vmem:[%s1931_s20 + $0x38] sm:$0xff]  ;;  %v1303_v1 = vld [vmem:[%s1931_s20 + $0x30] sm:$0xff]  ;;  %p577_p7 = scmp.lt.s32.totalorder %s1694_s12, 1  ;;  %s1290_s2 = sshll.u32 %s1694_s12, 3 }
  0x4c   : > { %655 = vmatpush.bf16.msra.mxu0 %v1304_v0  ;;  %v1312_v2 = vld [vmem:[%s1938_s16 + $0x38] sm:$0xff]  ;;  %v1311_v3 = vld [vmem:[%s1938_s16 + $0x30] sm:$0xff]  ;;  %v1302_v4 = vld [vmem:[%s1931_s20 + $0x28] sm:$0xff]  ;;  %s1160_s30 = sshll.u32 %s1928_s9, 3 }
  0x4d   : > { %738 = vmatpush.bf16.msra.mxu1 %v1312_v2  ;;  %v1310_v5 = vld [vmem:[%s1938_s16 + $0x28] sm:$0xff]  ;;  %v1301_v6 = vld [vmem:[%s1931_s20 + $0x20] sm:$0xff]  ;;  %v1300_v8 = vld [vmem:[%s1931_s20 + $0x18] sm:$0xff]  ;;  %s1969_s15 = scalar_select %p577_p7, %s1694_s12, 1 }
  0x4e   : > { %v1309_v7 = vld [vmem:[%s1938_s16 + $0x20] sm:$0xff]  ;;  %v1308_v9 = vld [vmem:[%s1938_s16 + $0x18] sm:$0xff]  ;;  %v1299_v10 = vld [vmem:[%s1931_s20 + $0x10] sm:$0xff] }
  0x4f   : > { %v1307_v11 = vld [vmem:[%s1938_s16 + $0x10] sm:$0xff]  ;;  %v1298_v12 = vld [vmem:[%s1931_s20 + $0x8] sm:$0xff]  ;;  %v1297_v13 = vld [vmem:[%s1931_s20] sm:$0xff]  ;;  %s579_s3 = scalar_lea.vmem %s2051_s4, %s1969_s15  ;;  %s582_s22 = scalar_lea.vmem %s2053_s6, %s1969_s15 }
  0x50   : > { %656 = vmatpush.bf16.msra.mxu0 %v1303_v1  ;;  %v586_v14 = vld [vmem:[#allocation2] sm:$0xf]  ;;  %v1306_v15 = vld [vmem:[%s1938_s16 + $0x8] sm:$0xff]  ;;  %v1305_v16 = vld [vmem:[%s1938_s16] sm:$0xff]  ;;  %s585_s14 = scalar_lea.vmem %s2055_s8, %s1969_s15  ;;  %s576_s16 = scalar_lea.vmem [#allocation13], %s1160_s30 }
  0x51   : > { %739 = vmatpush.bf16.msra.mxu1 %v1311_v3  ;;  %v1320_v17 = vld [vmem:[%s1944_s18 + $0x38] sm:$0xff]  ;;  %v1319_v18 = vld [vmem:[%s1944_s18 + $0x30] sm:$0xff]  ;;  %v1318_v19 = vld [vmem:[%s1944_s18 + $0x28] sm:$0xff] }
  0x52   : > { %821 = vmatpush.bf16.msra.mxu2 %v1320_v17  ;;  %v1317_v20 = vld [vmem:[%s1944_s18 + $0x20] sm:$0xff]  ;;  %v1316_v21 = vld [vmem:[%s1944_s18 + $0x18] sm:$0xff]  ;;  %v1315_v22 = vld [vmem:[%s1944_s18 + $0x10] sm:$0xff] }
  0x53   : > { %v1424_v23 = vld [vmem:[%s483_s21] ss:$0 sm:$0xff]  ;;  %v1314_v29 = vld [vmem:[%s1944_s18 + $0x8] sm:$0xff]  ;;  %v1313_v30 = vld [vmem:[%s1944_s18] sm:$0xff]  ;;  %s2093_s21 = sld [smem:[#allocation30_spill]]  ;;  %s932_s18 = sshll.u32 %s576_s16, 4  ;;  %s933_s18 = int_to_ptr.vmem [resolvable:$true] %s932_s18 }
  0x54   : > { %657 = vmatpush.bf16.msra.mxu0 %v1302_v4  ;;  %v1328_v31 = vld [vmem:[%s1947_s19 + $0x38] sm:$0xff]  ;;  %v1327_v32 = vld [vmem:[%s1947_s19 + $0x30] sm:$0xff]  ;;  %v1326_v33 = vld [vmem:[%s1947_s19 + $0x28] sm:$0xff] }
  0x55   : > { %740 = vmatpush.bf16.msra.mxu1 %v1310_v5  ;;  %904 = vmatpush.bf16.msra.mxu3 %v1328_v31  ;;  %v1325_v34 = vld [vmem:[%s1947_s19 + $0x20] sm:$0xff]  ;;  %v1324_v35 = vld [vmem:[%s1947_s19 + $0x18] sm:$0xff]  ;;  %v1323_v36 = vld [vmem:[%s1947_s19 + $0x10] sm:$0xff] }
  0x56   : > { %822 = vmatpush.bf16.msra.mxu2 %v1319_v18  ;;  %v1425_v37 = vld [vmem:[%s579_s3] ss:$0 sm:$0xff]  ;;  %v1322_v43 = vld [vmem:[%s1947_s19 + $0x8] sm:$0xff]  ;;  %v1321_v44 = vld [vmem:[%s1947_s19] sm:$0xff]  ;;  %s919_s19 = scalar_lea.sflag [#allocation4], %s1928_s9 }
  0x57   : > { %v1426_v45 = vld [vmem:[%s582_s22] ss:$0 sm:$0xff] }
  0x58   : > { %658 = vmatpush.bf16.msra.mxu0 %v1301_v6  ;;  %v1427_v51 = vld [vmem:[%s585_s14] ss:$0 sm:$0xff] }
  0x59   : > { %741 = vmatpush.bf16.msra.mxu1 %v1309_v7  ;;  %905 = vmatpush.bf16.msra.mxu3 %v1327_v32  ;;  %s930_s23 = scalar_lea.hbm %s2093_s21, %s1290_s2  ;;  %s1628_s3 = scalar_lea.hbm %s2093_s21, 16 }
  0x5a   : > { %823 = vmatpush.bf16.msra.mxu2 %v1318_v19  ;;  %s934_s27 = sshll.u32 %s930_s23, 4  ;;  %s935_s27 = int_to_ptr.hbm [resolvable:$true] %s934_s27 }
  0x5b   : > { %s1622_s15 = sshra.s32 %s935_s27, 4  ;;  %s1623_s15 = int_to_ptr.hbm [resolvable:$true] %s1622_s15 }
  0x5c   : > { %659 = vmatpush.bf16.msra.mxu0 %v1300_v8  ;;  %s1624_s28 = scalar_lea.hbm %s1623_s15, 8  ;;  %p1629_p11 = scmp.lt.s32.totalorder %s1623_s15, %s2093_s21 }
  0x5d   : > { %742 = vmatpush.bf16.msra.mxu1 %v1308_v9  ;;  %906 = vmatpush.bf16.msra.mxu3 %v1326_v33  ;;  %p1625_p8 = scmp.ne.s32.totalorder %s1623_s15, %s1624_s28  ;;  %p1630_p12 = scmp.lt.s32.totalorder %s1628_s3, %s1624_s28 }
  0x5e   : > { %824 = vmatpush.bf16.msra.mxu2 %v1317_v20 }
  0x5f   : > { %p1626_p9 = pnand %p1625_p8, %p1870_p0  ;;  %p1631_p13 = por %p1630_p12, %p1629_p11 }
  0x60   : > { %660 = vmatpush.bf16.msra.mxu0 %v1299_v10 }
  0x61   : > { %743 = vmatpush.bf16.msra.mxu1 %v1307_v11  ;;  %907 = vmatpush.bf16.msra.mxu3 %v1325_v34  ;;  %p1627_p10 = pneg %p1626_p9 }
  0x62   : > { %825 = vmatpush.bf16.msra.mxu2 %v1316_v21 }
  0x63   : > { %p1632_p4 = pnand %p1631_p13, %p1627_p10 }
  0x64   : > { %661 = vmatpush.bf16.msra.mxu0 %v1298_v12 }
  0x65   : > { %744 = vmatpush.bf16.msra.mxu1 %v1306_v15  ;;  %908 = vmatpush.bf16.msra.mxu3 %v1324_v35 }
  0x66   : > { %826 = vmatpush.bf16.msra.mxu2 %v1315_v22 }
  0x68   : > { %662 = vmatpush.bf16.msra.mxu0 %v1297_v13 }
  0x69   : > { %745 = vmatpush.bf16.msra.mxu1 %v1305_v16  ;;  %909 = vmatpush.bf16.msra.mxu3 %v1323_v36 }
  0x6a   : > { %827 = vmatpush.bf16.msra.mxu2 %v1314_v29 }
  0x6b   : > { %663 = vmatmul.bf16.vlgmr.msra.gmra.mxu0 %v586_v14 }
  0x6d   : > { %910 = vmatpush.bf16.msra.mxu3 %v1322_v43 }
  0x6e   : > { %828 = vmatpush.bf16.msra.mxu2 %v1313_v30 }
  0x71   : > { %911 = vmatpush.bf16.msra.mxu3 %v1321_v44 }
  0xe8   : > { %v664_v24 = vpop.f32.mrf.mxu0 }
  0xe9   : > { %v665_v25 = vadd.f32 %v1424_v23, %v664_v24 }
  0xeb   : > { %v668_v26 = vmax.f32 %v665_v25, 0.0 }
  0xed   : > { %v669_v27 = vpack.c.bf16 %v668_v26, %v668_v26 }
  0xef   : > { %746 = vmatmul.bf16.vlgmr.msra.gmra.mxu1 %v669_v27 }
  0xf0   : > { %v666_v28 = vpop.f32.mrf.mxu0 }
 0x16c   : > { %v747_v38 = vpop.f32.mrf.mxu1 }
 0x16d   : > { %v748_v39 = vadd.f32 %v1425_v37, %v747_v38 }
 0x16f   : > { %v751_v40 = vmax.f32 %v748_v39, 0.0 }
 0x171   : > { %v752_v41 = vpack.c.bf16 %v751_v40, %v751_v40 }
 0x173   : > { %829 = vmatmul.bf16.vlgmr.msra.gmra.mxu2 %v752_v41 }
 0x174   : > { %v749_v42 = vpop.f32.mrf.mxu1 }
 0x1f6   : > { %v830_v46 = vpop.f32.mrf.mxu2 }
 0x1f7   : > { %v831_v47 = vadd.f32 %v1426_v45, %v830_v46 }
 0x1f9   : > { %v834_v48 = vmax.f32 %v831_v47, 0.0 }
 0x1fb   : > { %v835_v49 = vpack.c.bf16 %v834_v48, %v834_v48 }
 0x1fd   : > { %912 = vmatmul.bf16.vlgmr.msra.gmra.mxu3 %v835_v49 }
 0x1fe   : > { %v832_v50 = vpop.f32.mrf.mxu2 }
 0x280   : > { %v913_v52 = vpop.f32.mrf.mxu3 }
 0x281   : > { %v914_v53 = vadd.f32 %v1427_v51, %v913_v52 }
 0x283   : > { %917 = vst [vmem:[%s576_s16] sm:$0xff] %v914_v53 }
 0x284   : > { %1635 = shalt.err (!%p1632_p4)
}
 0x285   : > { %1343 = dma.vmem_to_hbm [thread:$0]  (%p1870_p0), %s933_s18, 128, %s935_s27, %s919_s19  }
 0x288   : > { %v915_v54 = vpop.f32.mrf.mxu3 }
 0x289 PF: > { %s2094_s9 = sld [smem:[#allocation19_spill]]  ;;  %p1366_p5 = pnand %p1141_p3, %p1874_p2 }
 0x28a   : > { %s2096_s24 = sld [smem:[#allocation22_spill]] }
 0x28b   : > { %p1367_p1 = pneg %p1366_p5 }
 0x28f   : > { %s946_s26 = sand.u32 1, %s2094_s9  }
 0x290   : > { %s947_s0 = scalar_lea.sflag [#allocation4], %s946_s26 }
 0x291   : > { %1677 = dma.done.wait (%p1367_p1), %s947_s0, 128  }
 0x292   : > { %1679 = vsyncadd (%p1367_p1), %s947_s0, 4294967168  ;;  %s32_s14 = sadd.s32 1, %s2096_s24   ;;  %s2097_s11 = sld [smem:[#allocation20_spill]] }
 0x293   : > { %p29_p6 = scmp.ge.s32.totalorder %s32_s14, 4   ;;  %s2098_s1 = sld [smem:[#allocation24_spill]] }
 0x294   : > { %s2099_s12 = sld [smem:[#allocation21_spill]]  ;;  %s2101_s30 = smov %s1686_s10 }
 0x295   : > { %s2100_s13 = sld [smem:[#allocation23_spill]]  ;;  %31 = sbr.rel (!%p29_p6) target bundleno = 17 (0x11), region = 164 }
 0x298   : > { %s2102_s10 = smov %s2097_s11 }
 0x299   : > { %s2103_s11 = smov %s2098_s1 }
 0x29a   :  { %953 = vsyncpa [#allocation3], 1 }
 0x29b   :  { %955 = vsyncpa [#allocation3 + $0x1], 1 }
 0x29c   :  { %956 = vsyncpa [#allocation6], 1 }
 0x29d   :  { %958 = vsyncpa [#allocation6 + $0x1], 1 }
 0x29e   :  { %959 = vsyncpa [#allocation9], 1 }
 0x29f   :  { %961 = vsyncpa [#allocation9 + $0x1], 1 }
 0x2a0   :  { %962 = vsyncpa [#allocation12], 1 }
 0x2a1   :  { %964 = vsyncpa [#allocation12 + $0x1], 1 }
 0x2a2   :  { %965 = vsyncpa [#allocation4], 1 }
 0x2a3   :  { %967 = vsyncpa [#allocation4 + $0x1], 1 }

</bundles_post_ra>
